<compile_context>
chip_gen: v7x
topology: tpu7x:2x2x1
jax: 0.10.0
libtpu: 0.0.40
codegen_flags: <defaults>
</compile_context>

<pallas_src>
import functools

import jax
import jax.numpy as jnp
import numpy as np
from jax.experimental import pallas as pl
from jax.experimental.pallas import tpu as pltpu

NEG_SLOPE = 0.01     # PyTorch nn.LeakyReLU default negative_slope
LANE = 128
_MIB = 1024 * 1024
_NUM_TC = 2          # plan for v7x megacore; harmless on 1-TC v5e/v6e


def _leaky_relu(x):
    # max(x, a*x) == leaky_relu for a < 1; one VALU op cheaper than where().
    return jnp.maximum(x, NEG_SLOPE * x)


def _round_up(v, m):
    return (v + m - 1) // m * m


def _cdiv(a, b):
    return -(-a // b)


# --------------------------------------------------------------------------
# Kernel: fused 3-layer MLP on one row tile.  Matmul inputs are in the weight
# dtype (bf16 by default) so the MXU runs at full rate; accumulation, bias add
# and LeakyReLU stay in f32 on the VPU.  If x arrives as f32 (lane-aligned
# input_dim), it is cast in-kernel (VPU has slack; saves an HBM pass).
# --------------------------------------------------------------------------
def expert_kernel(x_ref, w1_ref, b1_ref, w2_ref, b2_ref, w3_ref, b3_ref, o_ref):
    cdt = w1_ref.dtype
    x = x_ref[...]
    if x.dtype != cdt:
        x = x.astype(cdt)
    h = jnp.dot(x, w1_ref[...], preferred_element_type=jnp.float32) + b1_ref[...]
    h = _leaky_relu(h)
    h = jnp.dot(h.astype(cdt), w2_ref[...],
                preferred_element_type=jnp.float32) + b2_ref[...]
    h = _leaky_relu(h)
    o = jnp.dot(h.astype(cdt), w3_ref[...],
                preferred_element_type=jnp.float32) + b3_ref[...]
    o_ref[...] = o.astype(o_ref.dtype)


def _probe_kernel(x_ref, o_ref):
    o_ref[...] = x_ref[...]


@functools.lru_cache(maxsize=None)
def _buffered_single_supported():
    """Feature-detect BlockSpec(pipeline_mode=pl.Buffered(1)) end-to-end.

    Probe compile of a trivial kernel; a broad except is fine HERE because it
    only gates an optimization on a throwaway kernel, never the real call.
    """
    try:
        spec = pl.BlockSpec((8, 128), lambda i: (0, 0), pipeline_mode=pl.Buffered(1))
    except (AttributeError, TypeError):
        return False
    try:
        f = pl.pallas_call(
            _probe_kernel,
            out_shape=jax.ShapeDtypeStruct((8, 128), jnp.float32),
            grid_spec=pltpu.PrefetchScalarGridSpec(
                num_scalar_prefetch=0,
                grid=(1,),
                in_specs=[spec],
                out_specs=pl.BlockSpec((8, 128), lambda i: (i, 0)),
            ),
        )
        jax.block_until_ready(f(jnp.zeros((8, 128), jnp.float32)))
        return True
    except Exception:
        return False


def _vmem_budgets():
    """Generation-aware VMEM working-set cap and scoped-vmem limit cap."""
    try:
        vmem_cap = int(pltpu.get_tpu_info().vmem_capacity_bytes)
    except Exception:
        vmem_cap = 64 * _MIB  # conservative default (v7x-sized VMEM)
    if vmem_cap >= 96 * _MIB:            # v5e / v6e: 128 MiB physical VMEM
        return 96 * _MIB, 110 * _MIB
    return 40 * _MIB, 56 * _MIB          # v7x: 64 MiB physical per TensorCore


def expert_forward(x, params, *, tile_n=256, compute_dtype=jnp.bfloat16):
    """x: [..., input_dim]. params: dict w1,b1,w2,b2,w3,b3 (weights [in, out])."""
    orig_shape = x.shape
    input_dim, hidden_dim = params["w1"].shape
    output_dim = params["w3"].shape[1]
    assert orig_shape[-1] == input_dim
    out_dtype = x.dtype

    x2 = x.reshape(-1, input_dim)
    n = x2.shape[0]

    # ---- feature dims padded to lane (128) multiples: lane-dense loads/stores
    #      and clean MXU K/N tiling; zero padding is mathematically exact.
    in_p = _round_up(input_dim, LANE)
    hid_p = _round_up(hidden_dim, LANE)
    out_p = _round_up(output_dim, LANE)

    compute_dtype = jnp.dtype(compute_dtype)
    cd_bytes = compute_dtype.itemsize
    out_bytes = jnp.dtype(out_dtype).itemsize
    row_mult = 16 if cd_bytes == 2 else 8   # sublane packing of the matmul dtype

    # ---- x: only touch it in the wrapper if feature padding is unavoidable.
    if in_p == input_dim:
        xp = x2                               # untouched; cast happens in-kernel
        x_bytes = jnp.dtype(x2.dtype).itemsize
    else:
        xp = jnp.pad(x2, ((0, 0), (0, in_p - input_dim))).astype(compute_dtype)
        x_bytes = cd_bytes

    # ---- weights / biases: pad + cast (weights -> compute dtype, biases f32).
    def pad2(a, rows, cols, dt):
        a = a.reshape(1, -1) if a.ndim == 1 else a
        return jnp.pad(a, ((0, rows - a.shape[0]), (0, cols - a.shape[1]))).astype(dt)

    w1 = pad2(params["w1"], in_p, hid_p, compute_dtype)
    w2 = pad2(params["w2"], hid_p, hid_p, compute_dtype)
    w3 = pad2(params["w3"], hid_p, out_p, compute_dtype)
    b1 = pad2(params["b1"], 1, hid_p, jnp.float32)
    b2 = pad2(params["b2"], 1, hid_p, jnp.float32)
    b3 = pad2(params["b3"], 1, out_p, jnp.float32)

    # ---- buffering of grid-invariant operands (feature-detected).
    single_buf = _buffered_single_supported()
    if single_buf:
        const_spec = lambda shape: pl.BlockSpec(
            shape, lambda i: (0, 0), pipeline_mode=pl.Buffered(1))
    else:
        const_spec = lambda shape: pl.BlockSpec(shape, lambda i: (0, 0))
    wbuf = 1 if single_buf else 2

    # ---- VMEM accounting (includes intermediates, casts and compiler scratch).
    weight_bytes = (in_p * hid_p + hid_p * hid_p + hid_p * out_p) * cd_bytes * wbuf
    bias_bytes = (2 * hid_p + out_p) * 4 * wbuf

    def vmem_estimate(tn):
        x_b = 2 * tn * in_p * x_bytes              # x tile, double-buffered
        o_b = 2 * tn * out_p * out_bytes           # out tile, double-buffered
        h_b = 2 * tn * hid_p * 4                   # two live f32 intermediates
        hc_b = 2 * tn * hid_p * cd_bytes           # their compute-dtype casts
        oc_b = tn * out_p * 4                      # f32 output before final cast
        xc_b = tn * in_p * cd_bytes if x_bytes != cd_bytes else 0
        scratch = 2 * _MIB                         # compiler-internal allowance
        return (weight_bytes + bias_bytes + x_b + o_b + h_b + hc_b + oc_b
                + xc_b + scratch)

    workset_cap, vmem_limit_cap = _vmem_budgets()

    if vmem_estimate(row_mult) > workset_cap:
        # TODO(synk): add a hidden-dim grid axis with an f32 VMEM accumulator
        # (pl.when init/finalize) so weight sets larger than VMEM still work.
        raise ValueError(
            f"Expert weights (~{weight_bytes / _MIB:.1f} MiB) exceed the "
            f"{workset_cap / _MIB:.0f} MiB VMEM working-set budget; "
            "hidden-dim tiling is not implemented.")

    # ---- row tile selection: grow toward the budget, shrink if over, then
    #      balance the step count across TensorCores.
    n_r = _round_up(max(n, 1), row_mult)
    tile = max(row_mult, min(_round_up(tile_n, row_mult), n_r))

    while (2 * tile <= n_r
           and _cdiv(n, 2 * tile) >= 2 * _NUM_TC
           and vmem_estimate(2 * tile) <= workset_cap):
        tile *= 2
    while vmem_estimate(tile) > workset_cap and tile > row_mult:
        tile = max(row_mult, _round_up(tile // 2, row_mult))

    steps = _cdiv(n, tile)
    if n > _NUM_TC * row_mult and steps < _NUM_TC:
        tile = max(row_mult, _round_up(_cdiv(n, _NUM_TC), row_mult))
        steps = _cdiv(n, tile)
    if steps > _NUM_TC and steps % _NUM_TC != 0:
        cand = max(row_mult, _round_up(_cdiv(n, _round_up(steps, _NUM_TC)), row_mult))
        if _cdiv(n, cand) % _NUM_TC == 0 and vmem_estimate(cand) <= workset_cap:
            tile = cand
    steps = _cdiv(n, tile)
    grid = (steps,)   # ragged last tile allowed: its junk rows never reach HBM

    vmem_limit = int(min(vmem_limit_cap,
                         max(32 * _MIB, vmem_estimate(tile) + 8 * _MIB)))

    out = pl.pallas_call(
        expert_kernel,
        out_shape=jax.ShapeDtypeStruct((n, out_p), out_dtype),
        grid_spec=pltpu.PrefetchScalarGridSpec(
            num_scalar_prefetch=0,
            grid=grid,
            in_specs=[
                pl.BlockSpec((tile, in_p), lambda i: (i, 0)),   # x row tile
                const_spec((in_p, hid_p)),                      # w1 (resident)
                const_spec((1, hid_p)),                         # b1
                const_spec((hid_p, hid_p)),                     # w2
                const_spec((1, hid_p)),                         # b2
                const_spec((hid_p, out_p)),                     # w3
                const_spec((1, out_p)),                         # b3
            ],
            out_specs=pl.BlockSpec((tile, out_p), lambda i: (i, 0)),
        ),
        compiler_params=pltpu.CompilerParams(
            dimension_semantics=("parallel",),
            vmem_limit_bytes=vmem_limit,
        ),
    )(xp, w1, b1, w2, b2, w3, b3)

    if out_p != output_dim:
        out = out[:, :output_dim]
    return out.reshape(*orig_shape[:-1], output_dim)


def init_expert_params(key, input_dim, hidden_dim, output_dim, dtype=jnp.float32):
    """nn.Linear-style init (uniform +/- 1/sqrt(fan_in)); weights stored [in, out]."""
    ks = jax.random.split(key, 6)

    def linear(kw, kb, fan_in, fan_out):
        bound = 1.0 / (fan_in ** 0.5)
        w = jax.random.uniform(kw, (fan_in, fan_out), dtype, -bound, bound)
        b = jax.random.uniform(kb, (1, fan_out), dtype, -bound, bound)
        return w, b

    w1, b1 = linear(ks[0], ks[1], input_dim, hidden_dim)
    w2, b2 = linear(ks[2], ks[3], hidden_dim, hidden_dim)
    w3, b3 = linear(ks[4], ks[5], hidden_dim, output_dim)
    return {"w1": w1, "b1": b1, "w2": w2, "b2": b2, "w3": w3, "b3": b3}


def expert_ref_np(x, p):
    """Host-side float64 reference (independent of TPU matmul precision)."""
    lrelu = lambda v: np.maximum(v, NEG_SLOPE * v)
    xf = np.asarray(x, np.float64)
    h = lrelu(xf @ np.asarray(p["w1"], np.float64) + np.asarray(p["b1"], np.float64))
    h = lrelu(h @ np.asarray(p["w2"], np.float64) + np.asarray(p["b2"], np.float64))
    return h @ np.asarray(p["w3"], np.float64) + np.asarray(p["b3"], np.float64)


if __name__ == "__main__":
    key = jax.random.PRNGKey(0)
    k1, k2, k3, k4 = jax.random.split(key, 4)

    # Case 1: non-lane-aligned dims (exercise feature padding + ragged grid).
    B, S, IN, HID, OUT = 4, 16, 32, 32, 16
    x1 = jax.random.normal(k1, (B, S, IN), dtype=jnp.float32)
    p1 = init_expert_params(k2, IN, HID, OUT)
    ref1 = expert_ref_np(x1, p1)

    # f32 matmul-input path.  Tolerance reflects TPU default matmul precision
    # (bf16 multiply passes, f32 accumulate) vs the float64 host reference.
    out1_f32 = jax.block_until_ready(
        expert_forward(x1, p1, compute_dtype=jnp.float32))
    assert out1_f32.shape == (B, S, OUT)
    assert np.allclose(np.asarray(out1_f32, np.float64), ref1,
                       rtol=4e-2, atol=4e-2), "f32 path mismatch vs reference"

    # Default path: bf16 matmul inputs, f32 accumulation (MXU fast path).
    out1_bf16 = jax.block_until_ready(expert_forward(x1, p1))
    assert out1_bf16.shape == (B, S, OUT)
    assert np.allclose(np.asarray(out1_bf16, np.float64), ref1,
                       rtol=7e-2, atol=7e-2), "bf16 path mismatch vs reference"

    # Case 2: lane-aligned dims (x passes through untouched, cast in-kernel)
    # with a row count that is not a multiple of the tile (ragged last block).
    B2, S2, IN2, HID2, OUT2 = 5, 8, 128, 128, 128
    x2 = jax.random.normal(k3, (B2, S2, IN2), dtype=jnp.float32)
    p2 = init_expert_params(k4, IN2, HID2, OUT2)
    ref2 = expert_ref_np(x2, p2)
    out2 = jax.block_until_ready(expert_forward(x2, p2))
    assert out2.shape == (B2, S2, OUT2)
    assert np.allclose(np.asarray(out2, np.float64), ref2,
                       rtol=7e-2, atol=7e-2), "aligned-path mismatch vs reference"

    print("KERNEL_OK")
</pallas_src>

<mosaic_0001>
module attributes {stable_mosaic.version = 11 : i64} {
  func.func @_probe_kernel(%arg0: i32, %arg1: memref<8x128xf32, #tpu.memory_space<vmem>>, %arg2: memref<8x128xf32, #tpu.memory_space<vmem>>) attributes {dimension_semantics = [#tpu.dimension_semantics<arbitrary>], iteration_bounds = array<i64: 1>, scalar_prefetch = 0 : i64, scratch_operands = 0 : i64, tpu.core_type = #tpu.core_type<tc>, window_params = [{pipeline_mode = #tpu.pipeline_mode<synchronous>, transform_indices = @transform_0, window_bounds = array<i64: 8, 128>}, {transform_indices = @transform_1, window_bounds = array<i64: 8, 128>}]} {
    %c0 = arith.constant 0 : index
    %c0_0 = arith.constant 0 : index
    %0 = vector.load %arg1[%c0, %c0_0] : memref<8x128xf32, #tpu.memory_space<vmem>>, vector<8x128xf32>
    %c0_1 = arith.constant 0 : index
    %c0_2 = arith.constant 0 : index
    %1 = vector.load %arg2[%c0_1, %c0_2] : memref<8x128xf32, #tpu.memory_space<vmem>>, vector<8x128xf32>
    tpu.vector_store %arg2[%c0_1, %c0_2], %0 {strides = array<i32>} : memref<8x128xf32, #tpu.memory_space<vmem>>, vector<8x128xf32>,
    return
  }
  func.func @transform_0(%arg0: i32) -> (i32, i32) {
    %c0_i32 = arith.constant 0 : i32
    %c0_i32_0 = arith.constant 0 : i32
    %c0_i32_1 = arith.constant 0 : i32
    return %c0_i32, %c0_i32_0 : i32, i32
  }
  func.func @transform_1(%arg0: i32) -> (i32, i32) {
    %c0_i32 = arith.constant 0 : i32
    %c0_i32_0 = arith.constant 0 : i32
    return %arg0, %c0_i32 : i32, i32
  }
}

module attributes {stable_mosaic.version = 11 : i64} {
  func.func @expert_kernel(%arg0: i32, %arg1: memref<32x128xf32, #tpu.memory_space<vmem>>, %arg2: memref<128x128xf32, #tpu.memory_space<vmem>>, %arg3: memref<1x128xf32, #tpu.memory_space<vmem>>, %arg4: memref<128x128xf32, #tpu.memory_space<vmem>>, %arg5: memref<1x128xf32, #tpu.memory_space<vmem>>, %arg6: memref<128x128xf32, #tpu.memory_space<vmem>>, %arg7: memref<1x128xf32, #tpu.memory_space<vmem>>, %arg8: memref<32x128xf32, #tpu.memory_space<vmem>>) attributes {dimension_semantics = [#tpu.dimension_semantics<parallel>], iteration_bounds = array<i64: 2>, scalar_prefetch = 0 : i64, scratch_operands = 0 : i64, tpu.core_type = #tpu.core_type<tc>, window_params = [{transform_indices = @transform_0, window_bounds = array<i64: 32, 128>}, {pipeline_mode = #tpu.pipeline_mode<synchronous>, transform_indices = @transform_1, window_bounds = array<i64: 128, 128>}, {pipeline_mode = #tpu.pipeline_mode<synchronous>, transform_indices = @transform_2, window_bounds = array<i64: 1, 128>}, {pipeline_mode = #tpu.pipeline_mode<synchronous>, transform_indices = @transform_3, window_bounds = array<i64: 128, 128>}, {pipeline_mode = #tpu.pipeline_mode<synchronous>, transform_indices = @transform_4, window_bounds = array<i64: 1, 128>}, {pipeline_mode = #tpu.pipeline_mode<synchronous>, transform_indices = @transform_5, window_bounds = array<i64: 128, 128>}, {pipeline_mode = #tpu.pipeline_mode<synchronous>, transform_indices = @transform_6, window_bounds = array<i64: 1, 128>}, {transform_indices = @transform_7, window_bounds = array<i64: 32, 128>}]} {
    %c0 = arith.constant 0 : index
    %c0_0 = arith.constant 0 : index
    %0 = vector.load %arg1[%c0, %c0_0] : memref<32x128xf32, #tpu.memory_space<vmem>>, vector<32x128xf32>
    %c0_1 = arith.constant 0 : index
    %c0_2 = arith.constant 0 : index
    %1 = vector.load %arg2[%c0_1, %c0_2] : memref<128x128xf32, #tpu.memory_space<vmem>>, vector<128x128xf32>
    %cst = arith.constant dense<0.000000e+00> : vector<32x128xf32>
    %2 = tpu.matmul %0, %1, %cst {dimension_numbers = #tpu.dot_dimension_numbers<[1], [0], [0], [1], [0, 0, 1, 1], [], []>} : vector<32x128xf32>, vector<128x128xf32>, vector<32x128xf32> -> vector<32x128xf32>
    %c0_3 = arith.constant 0 : index
    %c0_4 = arith.constant 0 : index
    %3 = vector.load %arg3[%c0_3, %c0_4] : memref<1x128xf32, #tpu.memory_space<vmem>>, vector<1x128xf32>
    %4 = vector.broadcast %3 : vector<1x128xf32> to vector<32x128xf32>
    %5 = arith.addf %2, %4 : vector<32x128xf32>
    %cst_5 = arith.constant 0.00999999977 : f32
    %6 = vector.broadcast %cst_5 : f32 to vector<32x128xf32>
    %7 = arith.mulf %6, %5 : vector<32x128xf32>
    %8 = arith.maximumf %5, %7 : vector<32x128xf32>
    %c0_6 = arith.constant 0 : index
    %c0_7 = arith.constant 0 : index
    %9 = vector.load %arg4[%c0_6, %c0_7] : memref<128x128xf32, #tpu.memory_space<vmem>>, vector<128x128xf32>
    %cst_8 = arith.constant dense<0.000000e+00> : vector<32x128xf32>
    %10 = tpu.matmul %8, %9, %cst_8 {dimension_numbers = #tpu.dot_dimension_numbers<[1], [0], [0], [1], [0, 0, 1, 1], [], []>} : vector<32x128xf32>, vector<128x128xf32>, vector<32x128xf32> -> vector<32x128xf32>
    %c0_9 = arith.constant 0 : index
    %c0_10 = arith.constant 0 : index
    %11 = vector.load %arg5[%c0_9, %c0_10] : memref<1x128xf32, #tpu.memory_space<vmem>>, vector<1x128xf32>
    %12 = vector.broadcast %11 : vector<1x128xf32> to vector<32x128xf32>
    %13 = arith.addf %10, %12 : vector<32x128xf32>
    %cst_11 = arith.constant 0.00999999977 : f32
    %14 = vector.broadcast %cst_11 : f32 to vector<32x128xf32>
    %15 = arith.mulf %14, %13 : vector<32x128xf32>
    %16 = arith.maximumf %13, %15 : vector<32x128xf32>
    %c0_12 = arith.constant 0 : index
    %c0_13 = arith.constant 0 : index
    %17 = vector.load %arg6[%c0_12, %c0_13] : memref<128x128xf32, #tpu.memory_space<vmem>>, vector<128x128xf32>
    %cst_14 = arith.constant dense<0.000000e+00> : vector<32x128xf32>
    %18 = tpu.matmul %16, %17, %cst_14 {dimension_numbers = #tpu.dot_dimension_numbers<[1], [0], [0], [1], [0, 0, 1, 1], [], []>} : vector<32x128xf32>, vector<128x128xf32>, vector<32x128xf32> -> vector<32x128xf32>
    %c0_15 = arith.constant 0 : index
    %c0_16 = arith.constant 0 : index
    %19 = vector.load %arg7[%c0_15, %c0_16] : memref<1x128xf32, #tpu.memory_space<vmem>>, vector<1x128xf32>
    %20 = vector.broadcast %19 : vector<1x128xf32> to vector<32x128xf32>
    %21 = arith.addf %18, %20 : vector<32x128xf32>
    %c0_17 = arith.constant 0 : index
    %c0_18 = arith.constant 0 : index
    %22 = vector.load %arg8[%c0_17, %c0_18] : memref<32x128xf32, #tpu.memory_space<vmem>>, vector<32x128xf32>
    tpu.vector_store %arg8[%c0_17, %c0_18], %21 {strides = array<i32>} : memref<32x128xf32, #tpu.memory_space<vmem>>, vector<32x128xf32>,
    return
  }
  func.func @transform_0(%arg0: i32) -> (i32, i32) {
    %c0_i32 = arith.constant 0 : i32
    %c0_i32_0 = arith.constant 0 : i32
    return %arg0, %c0_i32 : i32, i32
  }
  func.func @transform_1(%arg0: i32) -> (i32, i32) {
    %c0_i32 = arith.constant 0 : i32
    %c0_i32_0 = arith.constant 0 : i32
    %c0_i32_1 = arith.constant 0 : i32
    return %c0_i32, %c0_i32_0 : i32, i32
  }
  func.func @transform_2(%arg0: i32) -> (i32, i32) {
    %c0_i32 = arith.constant 0 : i32
    %c0_i32_0 = arith.constant 0 : i32
    %c0_i32_1 = arith.constant 0 : i32
    return %c0_i32, %c0_i32_0 : i32, i32
  }
  func.func @transform_3(%arg0: i32) -> (i32, i32) {
    %c0_i32 = arith.constant 0 : i32
    %c0_i32_0 = arith.constant 0 : i32
    %c0_i32_1 = arith.constant 0 : i32
    return %c0_i32, %c0_i32_0 : i32, i32
  }
  func.func @transform_4(%arg0: i32) -> (i32, i32) {
    %c0_i32 = arith.constant 0 : i32
    %c0_i32_0 = arith.constant 0 : i32
    %c0_i32_1 = arith.constant 0 : i32
    return %c0_i32, %c0_i32_0 : i32, i32
  }
  func.func @transform_5(%arg0: i32) -> (i32, i32) {
    %c0_i32 = arith.constant 0 : i32
    %c0_i32_0 = arith.constant 0 : i32
    %c0_i32_1 = arith.constant 0 : i32
    return %c0_i32, %c0_i32_0 : i32, i32
  }
  func.func @transform_6(%arg0: i32) -> (i32, i32) {
    %c0_i32 = arith.constant 0 : i32
    %c0_i32_0 = arith.constant 0 : i32
    %c0_i32_1 = arith.constant 0 : i32
    return %c0_i32, %c0_i32_0 : i32, i32
  }
  func.func @transform_7(%arg0: i32) -> (i32, i32) {
    %c0_i32 = arith.constant 0 : i32
    %c0_i32_0 = arith.constant 0 : i32
    return %arg0, %c0_i32 : i32, i32
  }
}

</mosaic_0001>

<bundles_post_ra>
// kernel: tpu_custom_call.1
= control target key start
LH: loop header
LB: loop body
LE: loop exit
PB: predicated region body
PF: predicated region fallthrough
CT: control target
= control target key end

     0   :  { %6 = vsyncpa [#allocation3], 0  ;;  %s124_s0 = inlined_call_operand.hbm [shape: f32[8,128], index: 0, kind: input, shape index: {}]   ;;  %s125_s1 = inlined_call_operand.hbm [shape: f32[8,128], index: 1, kind: output, shape index: {}]  }
   0x1   :  { %7 = vsyncpa [#allocation4], 0  ;;  %s88_s6 = smov [#allocation2]   ;;  %s40_s10 = scalar_lea.hbm %s124_s0, 128 }
   0x2   :  { %s14_s7 = sshll.u32 %s88_s6, 4  ;;  %p41_p0 = scmp.ne.s32.totalorder %s124_s0, %s40_s10  ;;  %s15_s7 = int_to_ptr.vmem [resolvable:$true] %s14_s7 }
   0x3   :  { %p44_p1 = scmp.lt.u32.totalorder %s40_s10, %s124_s0 }
   0x5   :  { %p46_p2 = pnand %p44_p1, %p41_p0 }
   0x7   :  { %49 = shalt.err (!%p46_p2)
}
   0x8   :  { %s50_s15 = scalar_lea.vmem %s15_s7, 128  ;;  %p55_p4 = scmp.lt.s32.totalorder %s15_s7, %s15_s7 }
   0x9   :  { %p51_p3 = scmp.ne.s32.totalorder %s15_s7, %s50_s15  ;;  %p56_p5 = scmp.lt.s32.totalorder %s50_s15, %s50_s15 }
   0xb   :  { %p57_p6 = por %p56_p5, %p55_p4 }
   0xd   :  { %p58_p7 = pnand %p57_p6, %p51_p3 }
   0xf   :  { %61 = shalt.err (!%p58_p7)
}
  0x10   :  { %17 = dma.hbm_to_vmem [thread:$0]  %s124_s0, 128, %s15_s7, [#allocation3]  }
  0x11   :  { %84 = dma.done.wait [#allocation3], 128  }
  0x12   :  { %85 = vsyncadd [#allocation3], 4294967168  ;;  %s89_s18 = smov [#allocation5]   ;;  %v21_v0 = vld [vmem:[#allocation2] sm:$0xff] }
  0x13   :  { %s29_s19 = sshll.u32 %s89_s18, 4  ;;  %22 = vst [vmem:[#allocation5] sm:$0xff] %v21_v0  ;;  %s30_s19 = int_to_ptr.vmem [resolvable:$true] %s29_s19 }
  0x14   :  { %s62_s20 = scalar_lea.vmem %s30_s19, 128  ;;  %p67_p9 = scmp.lt.s32.totalorder %s30_s19, %s30_s19 }
  0x15   :  { %p63_p8 = scmp.ne.s32.totalorder %s30_s19, %s62_s20  ;;  %p68_p10 = scmp.lt.s32.totalorder %s62_s20, %s62_s20 }
  0x17   :  { %p69_p11 = por %p68_p10, %p67_p9 }
  0x19   :  { %p70_p12 = pnand %p69_p11, %p63_p8 }
  0x1b   :  { %73 = shalt.err (!%p70_p12)
}
  0x1c   :  { %s74_s23 = scalar_lea.hbm %s125_s1, 128 }
  0x1d   :  { %p75_p13 = scmp.ne.s32.totalorder %s125_s1, %s74_s23  ;;  %p78_p0 = scmp.lt.u32.totalorder %s74_s23, %s125_s1 }
  0x1f   :  { %p80_p1 = pnand %p78_p0, %p75_p13 }
  0x21   :  { %83 = shalt.err (!%p80_p1)
}
  0x22   :  { %32 = dma.vmem_to_hbm [thread:$0]  %s30_s19, 128, %s125_s1, [#allocation4]  }
  0x23   :  { %86 = dma.done.wait [#allocation4], 128  }
  0x24   :  { %87 = vsyncadd [#allocation4], 4294967168 }
  0x25   :  { %36 = vsyncpa [#allocation3], 1 }
  0x26   :  { %37 = vsyncpa [#allocation4], 1 }

// kernel: tpu_custom_call.1
= control target key start
LH: loop header
LB: loop body
LE: loop exit
PB: predicated region body
PF: predicated region fallthrough
CT: control target
= control target key end

     0   :  { %12 = vsyncpa [#allocation3], 0  ;;  %s1728_s0 = inlined_call_operand.hbm [shape: f32[64,128], index: 0, kind: input, shape index: {}]   ;;  %s1729_s1 = inlined_call_operand.hbm [shape: f32[128,128], index: 1, kind: input, shape index: {}]   ;;  %s1730_s2 = inlined_call_operand.vmem [shape: f32[1,128], index: 2, kind: input, shape index: {}]   ;;  %s1731_s3 = inlined_call_operand.hbm [shape: f32[128,128], index: 3, kind: input, shape index: {}]   ;;  %s1732_s4 = inlined_call_operand.vmem [shape: f32[1,128], index: 4, kind: input, shape index: {}]   ;;  %s1733_s5 = inlined_call_operand.hbm [shape: f32[128,128], index: 5, kind: input, shape index: {}]   ;;  %s1734_s6 = inlined_call_operand.vmem [shape: f32[1,128], index: 6, kind: input, shape index: {}]   ;;  %s1735_s7 = inlined_call_operand.hbm [shape: f32[64,128], index: 7, kind: output, shape index: {}]  }
   0x1   :  { %14 = vsyncpa [#allocation3 + $0x1], 0 }
   0x2   :  { %15 = vsyncpa [#allocation6], 0 }
   0x3   :  { %16 = vsyncpa [#allocation9], 0 }
   0x4   :  { %17 = vsyncpa [#allocation4], 0 }
   0x5   :  { %19 = vsyncpa [#allocation4 + $0x1], 0  ;;  %s1438_s24 = smov 0   ;;  %s1440_s25 = smov 0  }
   0x6   :  { %s1442_s26 = smov 0   ;;  %s1444_s27 = smov 0  }
   0x7 LB: > { %s1459_s28 = sadd.s32 4294967295, %s1387_s27   ;;  %s807_s29 = sadd.s32 4294967294, %s1387_s27   ;;  %s1387_s27 = sphi %s1444_s27, %s1761_s27   ;;  %s1383_s26 = sphi %s1442_s26, %s1760_s26   ;;  %s1379_s25 = sphi %s1440_s25, %s1759_s25   ;;  %s1375_s24 = sphi %s1438_s24, %s1758_s24  }
   0x8   : > { %p45_p0 = scmp.ne.s32.totalorder %s1379_s25, %s1375_s24  ;;  %p1736_p1 = scmp.eq.s32.totalorder %s1459_s28, 0 }
   0x9   : > { %p201_p3 = scmp.eq.s32.totalorder %s807_s29, 1  ;;  %p808_p5 = scmp.ge.s32.totalorder %s1387_s27, 1 }
   0xa   : > { %p1468_p4 = por %p1736_p1, %p45_p0  ;;  %p208_p7 = scmp.lt.s32.totalorder %s1387_s27, 3 }
   0xb   : > { %p1473_p6 = por %p201_p3, %p45_p0  ;;  %s1389_s10 = smov [#allocation5]  }
   0xc   : > { %s1740_s30 = scalar_select %p1468_p4, 1, 0 }
   0xd   : > { %s1741_s8 = scalar_select %p1473_p6, 1, 0 }
   0xe   : > { %p1478_p8 = pnand %p808_p5, %p208_p7  ;;  %s220_s11 = sshll.u32 %s1389_s10, 4  ;;  %s1482_s11 = int_to_ptr.vmem [resolvable:$true] %s220_s11 }
   0xf   : > { %1742 = sst [smem:[#allocation15_spill]] %s1741_s8  ;;  %s1390_s13 = smov [#allocation7]  }
  0x10   : > { %s1743_s9 = scalar_select %p1478_p8, 1, 0 }
  0x11   : > { %p1134_p9 = pneg %p1478_p8  ;;  %s236_s14 = sshll.u32 %s1390_s13, 4  ;;  %s1493_s14 = int_to_ptr.vmem [resolvable:$true] %s236_s14 }
  0x12   : > { %s1391_s15 = smov [#allocation8]   ;;  %s1199_s19 = scalar_lea.hbm %s1729_s1, 2048 }
  0x13   : > { %p1489_p11 = pnand %p1134_p9, %p1736_p1  ;;  %s1495_s16 = sshll.u32 %s1391_s15, 4  ;;  %s253_s16 = int_to_ptr.vmem [resolvable:$true] %s1495_s16 }
  0x14   : > { %p1200_p12 = scmp.ne.s32.totalorder %s1729_s1, %s1199_s19  ;;  %p1206_p5 = scmp.lt.u32.totalorder %s1199_s19, %s1729_s1 }
  0x15   : > { %p1505_p13 = pneg %p1489_p11 }
  0x17   : > { %p1202_p0 = pnand %p1505_p13, %p1200_p12 }
  0x19   : > { %p1203_p3 = pneg %p1202_p0 }
  0x1b   : > { %p1208_p7 = pnand %p1206_p5, %p1203_p3 }
  0x1d   : > { %1211 = shalt.err (!%p1208_p7)
}
  0x1e   : > { %s1212_s10 = scalar_lea.vmem %s1482_s11, 2048  ;;  %p1220_p2 = scmp.lt.s32.totalorder %s1482_s11, %s1482_s11 }
  0x1f   : > { %p1213_p9 = scmp.ne.s32.totalorder %s1482_s11, %s1212_s10  ;;  %p1221_p6 = scmp.lt.s32.totalorder %s1212_s10, %s1212_s10 }
  0x21   : > { %p1215_p10 = pnand %p1213_p9, %p1505_p13  ;;  %p1222_p12 = por %p1221_p6, %p1220_p2 }
  0x23   : > { %p1216_p1 = pneg %p1215_p10 }
  0x25   : > { %p1223_p0 = pnand %p1222_p12, %p1216_p1 }
  0x27   : > { %1226 = shalt.err (!%p1223_p0)
}
  0x28   : > { %s1392_s13 = smov 128   ;;  %s1393_s15 = smov 8  }
  0x29   : > { %1137 = dma.hbm_to_vmem [thread:$0]  (!%p1489_p11), %s1729_s1, 2048, %s1482_s11, [#allocation6], %s1392_s13, %s1392_s13, %s1393_s15  }
  0x2a   : > { %s1227_s21 = scalar_lea.hbm %s1731_s3, 2048 }
  0x2b   : > { %p1228_p1 = scmp.ne.s32.totalorder %s1731_s3, %s1227_s21  ;;  %p1234_p10 = scmp.lt.u32.totalorder %s1227_s21, %s1731_s3 }
  0x2d   : > { %p1230_p2 = pnand %p1228_p1, %p1505_p13 }
  0x2f   : > { %p1231_p6 = pneg %p1230_p2 }
  0x31   : > { %p1236_p3 = pnand %p1234_p10, %p1231_p6 }
  0x33   : > { %1239 = shalt.err (!%p1236_p3)
}
  0x34   : > { %s1240_s11 = scalar_lea.vmem %s1493_s14, 2048  ;;  %p1248_p12 = scmp.lt.s32.totalorder %s1493_s14, %s1493_s14 }
  0x35   : > { %p1241_p5 = scmp.ne.s32.totalorder %s1493_s14, %s1240_s11  ;;  %p1249_p0 = scmp.lt.s32.totalorder %s1240_s11, %s1240_s11 }
  0x37   : > { %p1243_p7 = pnand %p1241_p5, %p1505_p13  ;;  %p1250_p1 = por %p1249_p0, %p1248_p12 }
  0x39   : > { %p1244_p9 = pneg %p1243_p7 }
  0x3b   : > { %p1251_p2 = pnand %p1250_p1, %p1244_p9 }
  0x3d   : > { %1254 = shalt.err (!%p1251_p2)
}
  0x3e   : > { %1140 = dma.hbm_to_vmem [thread:$0]  (!%p1489_p11), %s1731_s3, 2048, %s1493_s14, [#allocation6], %s1392_s13, %s1392_s13, %s1393_s15  }
  0x3f   : > { %s1255_s20 = scalar_lea.hbm %s1733_s5, 2048 }
  0x40   : > { %p1256_p6 = scmp.ne.s32.totalorder %s1733_s5, %s1255_s20  ;;  %p1262_p5 = scmp.lt.u32.totalorder %s1255_s20, %s1733_s5 }
  0x42   : > { %p1258_p10 = pnand %p1256_p6, %p1505_p13 }
  0x44   : > { %p1259_p3 = pneg %p1258_p10 }
  0x46   : > { %p1264_p7 = pnand %p1262_p5, %p1259_p3 }
  0x48   : > { %1267 = shalt.err (!%p1264_p7)
}
  0x49   : > { %s1268_s11 = scalar_lea.vmem %s253_s16, 2048  ;;  %p1276_p1 = scmp.lt.s32.totalorder %s253_s16, %s253_s16 }
  0x4a   : > { %p1269_p9 = scmp.ne.s32.totalorder %s253_s16, %s1268_s11  ;;  %p1277_p2 = scmp.lt.s32.totalorder %s1268_s11, %s1268_s11 }
  0x4c   : > { %p1271_p12 = pnand %p1269_p9, %p1505_p13  ;;  %p1278_p4 = por %p1277_p2, %p1276_p1 }
  0x4e   : > { %p1272_p0 = pneg %p1271_p12 }
  0x50   : > { %p1279_p8 = pnand %p1278_p4, %p1272_p0 }
  0x52   : > { %1282 = shalt.err (!%p1279_p8)
}
  0x53   : > { %1143 = dma.hbm_to_vmem [thread:$0]  (!%p1489_p11), %s1733_s5, 2048, %s253_s16, [#allocation9], %s1392_s13, %s1392_s13, %s1393_s15  }
  0x54   : > { %s1578_s22 = sadd.s32 1, %s1387_s27   ;;  %s32_s17 = sadd.s32 1, %s1383_s26 }
  0x55   : > { %s29_s12 = ssub.s32 %s1387_s27, %s1578_s22  ;;  %p39_p8 = scmp.ne.s32.totalorder %s1383_s26, %s1379_s25 }
  0x56   : > { %p30_p4 = scmp.eq.s32.totalorder %s29_s12, 0  ;;  %p40_p13 = scmp.eq.s32.totalorder %s1387_s27, 0 }
  0x57   : > { %p1155_p6 = scmp.lt.s32.totalorder %s1387_s27, 2  ;;  %p1746_p3 = scmp.eq.s32.totalorder %s1459_s28, 1 }
  0x58   : > { %s1588_s18 = scalar_select %p30_p4, %s1383_s26, %s32_s17  }
  0x59   : > { %p41_p10 = por %p40_p13, %p39_p8  ;;  %p1592_p5 = por %p1746_p3, %p39_p8 }
  0x5a   : > { %s269_s20 = sand.u32 1, %s1383_s26   ;;  %s830_s21 = sshll.u32 %s1387_s27, 9 }
  0x5b   : > { %s813_s16 = sshll.u32 %s269_s20, 5  ;;  %s1601_s10 = scalar_lea.hbm %s1728_s0, %s830_s21 }
  0x5c   : > { %s273_s11 = scalar_lea.vmem [#allocation2], %s813_s16  ;;  %p1603_p11 = pnand %p1155_p6, %p41_p10 }
  0x5d   : > { %s280_s14 = sshll.u32 %s273_s11, 4  ;;  %s1609_s12 = scalar_lea.sflag [#allocation3], %s269_s20  ;;  %s1607_s14 = int_to_ptr.vmem [resolvable:$true] %s280_s14 }
  0x5e   : > { %s1283_s17 = scalar_lea.hbm %s1601_s10, 512  ;;  %p1285_p9 = pneg %p1603_p11 }
  0x5f   : > { %p1284_p7 = scmp.ne.s32.totalorder %s1601_s10, %s1283_s17  ;;  %s1288_s23 = scalar_lea.hbm %s1728_s0, 1024 }
  0x60   : > { %p1289_p1 = scmp.lt.u32.totalorder %s1601_s10, %s1728_s0  ;;  %p1290_p2 = scmp.lt.u32.totalorder %s1288_s23, %s1283_s17 }
  0x61   : > { %p1286_p12 = pnand %p1285_p9, %p1284_p7  ;;  %p1292_p8 = scmp.lt.u32.totalorder %s1283_s17, %s1601_s10 }
  0x62   : > { %p1291_p4 = por %p1290_p2, %p1289_p1 }
  0x63   : > { %p1287_p0 = pneg %p1286_p12 }
  0x64   : > { %p1293_p13 = por %p1292_p8, %p1291_p4 }
  0x66   : > { %p1294_p6 = pnand %p1293_p13, %p1287_p0 }
  0x68   : > { %1297 = shalt.err (!%p1294_p6)
}
  0x69   : > { %s1298_s20 = scalar_lea.vmem %s1607_s14, 512  ;;  %s1394_s21 = smov [#allocation2]  }
  0x6a   : > { %p1299_p10 = scmp.ne.s32.totalorder %s1607_s14, %s1298_s20  ;;  %s1303_s16 = sshll.u32 %s1394_s21, 4  ;;  %s1304_s16 = int_to_ptr.vmem [resolvable:$false] %s1303_s16 }
  0x6b   : > { %s1305_s29 = scalar_lea.vmem %s1304_s16, 1024  ;;  %p1306_p12 = scmp.lt.s32.totalorder %s1607_s14, %s1304_s16 }
  0x6c   : > { %p1301_p3 = pnand %p1299_p10, %p1285_p9  ;;  %p1307_p1 = scmp.lt.s32.totalorder %s1305_s29, %s1298_s20 }
  0x6e   : > { %p1302_p7 = pneg %p1301_p3  ;;  %p1308_p2 = por %p1307_p1, %p1306_p12 }
  0x70   : > { %p1309_p4 = pnand %p1308_p2, %p1302_p7 }
  0x72   : > { %1312 = shalt.err (!%p1309_p4)
}
  0x73   : > { %1147 = dma.hbm_to_vmem [thread:$0]  (!%p1603_p11), %s1601_s10, 512, %s1607_s14, %s1609_s12, %s1392_s13, %s1392_s13, %s1393_s15  }
  0x74   : > { %p1749_p9 = scmp.ne.s32.totalorder %s1743_s9, 0 }
  0x75   : > { %s1643_s17 = sand.u32 (!%p1749_p9), 1, %s1379_s25   ;;  %p1750_p0 = scmp.ne.s32.totalorder (!%p1749_p9), %s1740_s30, 0 }
  0x76   : > { %292 = sbr.rel (%p1749_p9) target bundleno = 842 (0x34a), region = 48  ;;  %s817_s23 = sshll.u32 (!%p1749_p9), %s1643_s17, 5 }
  0x77   : > { %s295_s11 = scalar_lea.sflag (!%p1749_p9), [#allocation3], %s1643_s17  ;;  %s1649_s8 = scalar_lea.vmem (!%p1749_p9), [#allocation2], %s817_s23 }
  0x7d   : > { %1358 = dma.done.wait (%p1750_p0), %s295_s11, 512  }
  0x7e   : > { %1360 = vsyncadd (%p1750_p0), %s295_s11, 4294966784  ;;  %p1751_p11 = scmp.eq.s32.totalorder %s1459_s28, 0 }
  0x80   : > { %1362 = dma.done.wait (%p1751_p11), [#allocation6], 4096   ;;  %p1752_p8 = pmov %p1751_p11 }
  0x82   : > { %1364 = vsyncadd (%p1752_p8), [#allocation6], 4294963200  ;;  %p1753_p13 = pmov %p1752_p8 }
  0x83   : > { %p1754_p6 = pmov %p1752_p8 }
  0x84   : > { %1366 = dma.done.wait (%p1753_p13), [#allocation9], 2048  }
  0x85   : > { %1368 = vsyncadd (%p1754_p6), [#allocation9], 4294965248  ;;  %v347_v0 = vld [vmem:[#allocation5] sm:$0xff]  ;;  %v348_v1 = vld [vmem:[#allocation5 + $0x8] sm:$0xff]  ;;  %s340_s12 = scalar_lea.vmem [#allocation10], %s817_s23  ;;  %s831_s21 = sshll.u32 %s1459_s28, 9 }
  0x86   : > { %v349_v2 = vld [vmem:[#allocation5 + $0x10] sm:$0xff]  ;;  %v1006_v3 = vpack.c.bf16 %v348_v1, %v347_v0  ;;  %v350_v4 = vld [vmem:[#allocation5 + $0x18] sm:$0xff]  ;;  %v351_v6 = vld [vmem:[#allocation5 + $0x20] sm:$0xff]  ;;  %s705_s20 = sshll.u32 %s340_s12, 4  ;;  %s1684_s11 = scalar_lea.hbm %s1735_s7, %s831_s21  ;;  %s1679_s20 = int_to_ptr.vmem [resolvable:$true] %s705_s20 }
  0x87   : > { %v1010_v5 = vpack.c.bf16 %v350_v4, %v349_v2  ;;  %v352_v7 = vld [vmem:[#allocation5 + $0x28] sm:$0xff]  ;;  %v343_v9 = vld [vmem:[%s1649_s8] sm:$0xff]  ;;  %v353_v10 = vld [vmem:[#allocation5 + $0x30] sm:$0xff]  ;;  %s692_s23 = scalar_lea.sflag [#allocation4], %s1643_s17  ;;  %s1313_s28 = scalar_lea.vmem %s1679_s20, 512 }
  0x88   : > { %1007 = vmatprep.subr.bf16.mxu0 %v1006_v3  ;;  %v1014_v8 = vpack.c.bf16 %v352_v7, %v351_v6  ;;  %v354_v11 = vld [vmem:[#allocation5 + $0x38] sm:$0xff]  ;;  %924 = vmatprep.mubr.f32.mxu0 %v343_v9  ;;  %v463_v12 = vld [vmem:[#allocation7] sm:$0xff]  ;;  %v464_v13 = vld [vmem:[#allocation7 + $0x8] sm:$0xff]  ;;  %p1314_p10 = scmp.ne.s32.totalorder %s1679_s20, %s1313_s28 }
  0x89   : > { %1009 = vmatpush3.bf16.msra.mxu0 %v1006_v3  ;;  %v465_v14 = vld [vmem:[#allocation7 + $0x10] sm:$0xff]  ;;  %v466_v15 = vld [vmem:[#allocation7 + $0x18] sm:$0xff]  ;;  %v1038_v16 = vpack.c.bf16 %v464_v13, %v463_v12  ;;  %v1018_v18 = vpack.c.bf16 %v354_v11, %v353_v10  ;;  %v467_v19 = vld [vmem:[#allocation7 + $0x20] sm:$0xff] }
  0x8a   : > { %1011 = vmatprep.subr.bf16.mxu0 %v1010_v5  ;;  %v1042_v17 = vpack.c.bf16 %v466_v15, %v465_v14  ;;  %v468_v20 = vld [vmem:[#allocation7 + $0x28] sm:$0xff]  ;;  %v355_v21 = vld [vmem:[#allocation5 + $0x40] sm:$0xff]  ;;  %v469_v25 = vld [vmem:[#allocation7 + $0x30] sm:$0xff]  ;;  %p1315_p3 = pnand %p1314_p10, %p1592_p5 }
  0x8b   : > { %v356_v22 = vld [vmem:[#allocation5 + $0x48] sm:$0xff]  ;;  %1039 = vmatprep.subr.bf16.mxu1 %v1038_v16  ;;  %v1046_v23 = vpack.c.bf16 %v468_v20, %v467_v19  ;;  %v470_v26 = vld [vmem:[#allocation7 + $0x38] sm:$0xff]  ;;  %v357_v27 = vld [vmem:[#allocation5 + $0x50] sm:$0xff] }
  0x8c   : > { %1041 = vmatpush3.bf16.msra.mxu1 %v1038_v16  ;;  %v1022_v24 = vpack.c.bf16 %v356_v22, %v355_v21  ;;  %v358_v28 = vld [vmem:[#allocation5 + $0x58] sm:$0xff]  ;;  %v1050_v29 = vpack.c.bf16 %v470_v26, %v469_v25  ;;  %v471_v31 = vld [vmem:[#allocation7 + $0x40] sm:$0xff]  ;;  %v472_v32 = vld [vmem:[#allocation7 + $0x48] sm:$0xff]  ;;  %p1316_p7 = pneg %p1315_p3 }
  0x8d   : > { %1013 = vmatpush3.bf16.msra.mxu0 %v1010_v5  ;;  %1043 = vmatprep.subr.bf16.mxu1 %v1042_v17  ;;  %v1026_v30 = vpack.c.bf16 %v358_v28, %v357_v27  ;;  %v359_v33 = vld [vmem:[#allocation5 + $0x60] sm:$0xff]  ;;  %v360_v34 = vld [vmem:[#allocation5 + $0x68] sm:$0xff]  ;;  %v1054_v35 = vpack.c.bf16 %v472_v32, %v471_v31  ;;  %v473_v37 = vld [vmem:[#allocation7 + $0x50] sm:$0xff] }
  0x8e   : > { %1015 = vmatprep.subr.bf16.mxu0 %v1014_v8  ;;  %v1030_v36 = vpack.c.bf16 %v360_v34, %v359_v33  ;;  %v474_v38 = vld [vmem:[#allocation7 + $0x58] sm:$0xff]  ;;  %v361_v39 = vld [vmem:[#allocation5 + $0x70] sm:$0xff]  ;;  %v344_v43 = vld [vmem:[%s1649_s8 + $0x8] sm:$0xff] }
  0x8f   : > { %v362_v40 = vld [vmem:[#allocation5 + $0x78] sm:$0xff]  ;;  %v1058_v41 = vpack.c.bf16 %v474_v38, %v473_v37  ;;  %v345_v44 = vld [vmem:[%s1649_s8 + $0x10] sm:$0xff]  ;;  %v475_v46 = vld [vmem:[#allocation7 + $0x60] sm:$0xff] }
  0x90   : > { %1045 = vmatpush3.bf16.msra.mxu1 %v1042_v17  ;;  %v1034_v42 = vpack.c.bf16 %v362_v40, %v361_v39  ;;  %v346_v45 = vld [vmem:[%s1649_s8 + $0x18] sm:$0xff]  ;;  %v476_v47 = vld [vmem:[#allocation7 + $0x68] sm:$0xff]  ;;  %v477_v49 = vld [vmem:[#allocation7 + $0x70] sm:$0xff]  ;;  %s1395_s8 = smov [#allocation10]  }
  0x91   : > { %1017 = vmatpush3.bf16.msra.mxu0 %v1014_v8  ;;  %1047 = vmatprep.subr.bf16.mxu1 %v1046_v23  ;;  %v1062_v48 = vpack.c.bf16 %v476_v47, %v475_v46  ;;  %v478_v50 = vld [vmem:[#allocation7 + $0x78] sm:$0xff]  ;;  %v579_v52 = vld [vmem:[#allocation8] sm:$0xff]  ;;  %v580_v53 = vld [vmem:[#allocation8 + $0x8] sm:$0xff]  ;;  %s1317_s30 = sshll.u32 %s1395_s8, 4  ;;  %s1318_s30 = int_to_ptr.vmem [resolvable:$false] %s1317_s30 }
  0x92   : > { %1019 = vmatprep.subr.bf16.mxu0 %v1018_v18  ;;  %v1066_v51 = vpack.c.bf16 %v478_v50, %v477_v49  ;;  %v581_v54 = vld [vmem:[#allocation8 + $0x10] sm:$0xff]  ;;  %v1070_v55 = vpack.c.bf16 %v580_v53, %v579_v52  ;;  %v582_v56 = vld [vmem:[#allocation8 + $0x18] sm:$0xff]  ;;  %v583_v58 = vld [vmem:[#allocation8 + $0x20] sm:$0xff]  ;;  %s1319_s9 = scalar_lea.vmem %s1318_s30, 1024  ;;  %p1320_p12 = scmp.lt.s32.totalorder %s1679_s20, %s1318_s30 }
  0x93   : > { %v1074_v57 = vpack.c.bf16 %v582_v56, %v581_v54  ;;  %v584_v59 = vld [vmem:[#allocation8 + $0x28] sm:$0xff]  ;;  %v585_v61 = vld [vmem:[#allocation8 + $0x30] sm:$0xff]  ;;  %v586_v62 = vld [vmem:[#allocation8 + $0x38] sm:$0xff]  ;;  %p1321_p1 = scmp.lt.s32.totalorder %s1319_s9, %s1313_s28 }
  0x94   : > { %1049 = vmatpush3.bf16.msra.mxu1 %v1046_v23  ;;  %v1078_v60 = vpack.c.bf16 %v584_v59, %v583_v58  ;;  %v1082_v63 = vpack.c.bf16 %v586_v62, %v585_v61  ;;  %v587_v0 = vld [vmem:[#allocation8 + $0x40] sm:$0xff]  ;;  %v588_v1 = vld [vmem:[#allocation8 + $0x48] sm:$0xff]  ;;  %v589_v3 = vld [vmem:[#allocation8 + $0x50] sm:$0xff] }
  0x95   : > { %1021 = vmatpush3.bf16.msra.mxu0 %v1018_v18  ;;  %1051 = vmatprep.subr.bf16.mxu1 %v1050_v29  ;;  %v1086_v2 = vpack.c.bf16 %v588_v1, %v587_v0  ;;  %v590_v4 = vld [vmem:[#allocation8 + $0x58] sm:$0xff]  ;;  %v822_v6 = vld [vmem:[%s1730_s2] ss:$0 sm:$0xff]  ;;  %v593_v26 = vld [vmem:[#allocation8 + $0x70] sm:$0xff]  ;;  %p1322_p2 = por %p1321_p1, %p1320_p12 }
  0x96   : > { %1023 = vmatprep.subr.bf16.mxu0 %v1022_v24  ;;  %v1090_v5 = vpack.c.bf16 %v590_v4, %v589_v3  ;;  %v591_v23 = vld [vmem:[#allocation8 + $0x60] sm:$0xff]  ;;  %v594_v27 = vld [vmem:[#allocation8 + $0x78] sm:$0xff] }
  0x97   : > { %v1098_v28 = vpack.c.bf16 %v594_v27, %v593_v26  ;;  %v824_v46 = vld [vmem:[%s1734_s6] ss:$0 sm:$0xff]  ;;  %p1323_p4 = pnand %p1322_p2, %p1316_p7 }
  0x98   : > { %1053 = vmatpush3.bf16.msra.mxu1 %v1050_v29  ;;  %v823_v29 = vld [vmem:[%s1732_s4] ss:$0 sm:$0xff] }
  0x99   : > { %1025 = vmatpush3.bf16.msra.mxu0 %v1022_v24  ;;  %1055 = vmatprep.subr.bf16.mxu1 %v1054_v35  ;;  %v592_v24 = vld [vmem:[#allocation8 + $0x68] sm:$0xff] }
  0x9a   : > { %1027 = vmatprep.subr.bf16.mxu0 %v1026_v30  ;;  %v1094_v25 = vpack.c.bf16 %v592_v24, %v591_v23 }
  0x9c   : > { %1057 = vmatpush3.bf16.msra.mxu1 %v1054_v35 }
  0x9d   : > { %1029 = vmatpush3.bf16.msra.mxu0 %v1026_v30  ;;  %1059 = vmatprep.subr.bf16.mxu1 %v1058_v41 }
  0x9e   : > { %1031 = vmatprep.subr.bf16.mxu0 %v1030_v36 }
  0xa0   : > { %1061 = vmatpush3.bf16.msra.mxu1 %v1058_v41 }
  0xa1   : > { %1033 = vmatpush3.bf16.msra.mxu0 %v1030_v36  ;;  %1063 = vmatprep.subr.bf16.mxu1 %v1062_v48 }
  0xa2   : > { %1035 = vmatprep.subr.bf16.mxu0 %v1034_v42 }
  0xa4   : > { %1065 = vmatpush3.bf16.msra.mxu1 %v1062_v48 }
  0xa5   : > { %1037 = vmatpush3.bf16.msra.mxu0 %v1034_v42  ;;  %1067 = vmatprep.subr.bf16.mxu1 %v1066_v51 }
  0xa6   : > { %1071 = vmatprep.subr.bf16.mxu0 %v1070_v55 }
  0xa8   : > { %925 = vmatmul.mubr.f32.vlgmr.msra.gmra.mrb[0].mxu0 %v344_v43  ;;  %1069 = vmatpush3.bf16.msra.mxu1 %v1066_v51 }
  0xa9   : > { %927 = vmatprep.mubr.f32.mxu0 %v345_v44  ;;  %1102 = vmatprep.subr.bf16.mxu1 %v1070_v55 }
  0xaa   : > { %1073 = vmatpush3.bf16.msra.mxu0 %v1070_v55 }
  0xab   : > { %1075 = vmatprep.subr.bf16.mxu0 %v1074_v57 }
  0xac   : > { %928 = vmatmul.mubr.f32.gmra.mrb[2].mxu0 %v346_v45 }
  0xae   : > { %1077 = vmatpush3.bf16.msra.mxu0 %v1074_v57 }
  0xaf   : > { %1079 = vmatprep.subr.bf16.mxu0 %v1078_v60 }
  0xb2   : > { %1081 = vmatpush3.bf16.msra.mxu0 %v1078_v60 }
  0xb3   : > { %1083 = vmatprep.subr.bf16.mxu0 %v1082_v63 }
  0xb6   : > { %1085 = vmatpush3.bf16.msra.mxu0 %v1082_v63 }
  0xb7   : > { %1087 = vmatprep.subr.bf16.mxu0 %v1086_v2 }
  0xba   : > { %1089 = vmatpush3.bf16.msra.mxu0 %v1086_v2 }
  0xbb   : > { %1091 = vmatprep.subr.bf16.mxu0 %v1090_v5 }
  0xbe   : > { %1093 = vmatpush3.bf16.msra.mxu0 %v1090_v5 }
  0xbf   : > { %1095 = vmatprep.subr.bf16.mxu0 %v1094_v25 }
  0xc2   : > { %1097 = vmatpush3.bf16.msra.mxu0 %v1094_v25 }
  0xc3   : > { %1099 = vmatprep.subr.bf16.mxu0 %v1098_v28 }
  0xc6   : > { %1101 = vmatpush3.bf16.msra.mxu0 %v1098_v28 }
 0x17b   : > { %v926_v7 = vpop.f32.mrb[0].mxu0 }
 0x17c   : > { %v442_v8 = vadd.f32 %v926_v7, %v822_v6  ;;  %v436_v9 = vpop.f32.mrb[1].mxu0 }
 0x17d   : > { %v437_v10 = vadd.f32 %v822_v6, %v436_v9 }
 0x17e   : > { %v456_v11 = vmul.f32 0.01, %v442_v8 }
 0x17f   : > { %v929_v12 = vpop.f32.mrb[2].mxu0  ;;  %v455_v13 = vmul.f32 0.01, %v437_v10 }
 0x180   : > { %v452_v14 = vadd.f32 %v929_v12, %v822_v6  ;;  %v446_v15 = vpop.f32.mrb[3].mxu0  ;;  %v460_v18 = vmax.f32 %v442_v8, %v456_v11 }
 0x181   : > { %v447_v16 = vadd.f32 %v822_v6, %v446_v15  ;;  %v459_v17 = vmax.f32 %v437_v10, %v455_v13 }
 0x182   : > { %v458_v19 = vmul.f32 0.01, %v452_v14 }
 0x183   : > { %v457_v20 = vmul.f32 0.01, %v447_v16  ;;  %962 = vmatprep.mubr.f32.mxu1 %v459_v17 }
 0x184   : > { %963 = vmatmul.mubr.f32.vlgmr.msra.gmra.mrb[0].mxu1 %v460_v18  ;;  %v462_v22 = vmax.f32 %v452_v14, %v458_v19 }
 0x185   : > { %v461_v21 = vmax.f32 %v447_v16, %v457_v20  ;;  %1110 = vmatpush3.bf16.msra.mxu1 %v1070_v55 }
 0x186   : > { %1103 = vmatprep.subr.bf16.mxu1 %v1074_v57 }
 0x187   : > { %965 = vmatprep.mubr.f32.mxu1 %v461_v21 }
 0x188   : > { %966 = vmatmul.mubr.f32.gmra.mrb[2].mxu1 %v462_v22 }
 0x189   : > { %1111 = vmatpush3.bf16.msra.mxu1 %v1074_v57 }
 0x18a   : > { %1104 = vmatprep.subr.bf16.mxu1 %v1078_v60 }
 0x18d   : > { %1112 = vmatpush3.bf16.msra.mxu1 %v1078_v60 }
 0x18e   : > { %1105 = vmatprep.subr.bf16.mxu1 %v1082_v63 }
 0x191   : > { %1113 = vmatpush3.bf16.msra.mxu1 %v1082_v63 }
 0x192   : > { %1106 = vmatprep.subr.bf16.mxu1 %v1086_v2 }
 0x195   : > { %1114 = vmatpush3.bf16.msra.mxu1 %v1086_v2 }
 0x196   : > { %1107 = vmatprep.subr.bf16.mxu1 %v1090_v5 }
 0x199   : > { %1115 = vmatpush3.bf16.msra.mxu1 %v1090_v5 }
 0x19a   : > { %1108 = vmatprep.subr.bf16.mxu1 %v1094_v25 }
 0x19d   : > { %1116 = vmatpush3.bf16.msra.mxu1 %v1094_v25 }
 0x19e   : > { %1109 = vmatprep.subr.bf16.mxu1 %v1098_v28 }
 0x1a1   : > { %1117 = vmatpush3.bf16.msra.mxu1 %v1098_v28 }
 0x257   : > { %v964_v30 = vpop.f32.mrb[0].mxu1 }
 0x258   : > { %v558_v31 = vadd.f32 %v964_v30, %v823_v29  ;;  %v552_v32 = vpop.f32.mrb[1].mxu1 }
 0x259   : > { %v553_v33 = vadd.f32 %v823_v29, %v552_v32 }
 0x25a   : > { %v572_v34 = vmul.f32 0.01, %v558_v31 }
 0x25b   : > { %v571_v35 = vmul.f32 0.01, %v553_v33  ;;  %v967_v36 = vpop.f32.mrb[2].mxu1 }
 0x25c   : > { %v568_v37 = vadd.f32 %v967_v36, %v823_v29  ;;  %v562_v38 = vpop.f32.mrb[3].mxu1  ;;  %v576_v41 = vmax.f32 %v558_v31, %v572_v34 }
 0x25d   : > { %v575_v39 = vmax.f32 %v553_v33, %v571_v35  ;;  %v563_v40 = vadd.f32 %v823_v29, %v562_v38 }
 0x25e   : > { %v574_v42 = vmul.f32 0.01, %v568_v37 }
 0x25f   : > { %v573_v43 = vmul.f32 0.01, %v563_v40  ;;  %1000 = vmatprep.mubr.f32.mxu0 %v575_v39 }
 0x260   : > { %1001 = vmatmul.mubr.f32.vlgmr.msra.gmra.mrb[4].mxu0 %v576_v41  ;;  %v578_v45 = vmax.f32 %v568_v37, %v574_v42 }
 0x261   : > { %v577_v44 = vmax.f32 %v563_v40, %v573_v43 }
 0x263   : > { %1003 = vmatprep.mubr.f32.mxu1 %v577_v44 }
 0x264   : > { %1004 = vmatmul.mubr.f32.vlgmr.msra.gmra.mrb[4].mxu1 %v578_v45 }
 0x333   : > { %v1002_v47 = vpop.f32.mrb[4].mxu0 }
 0x334   : > { %v674_v48 = vadd.f32 %v1002_v47, %v824_v46  ;;  %v668_v49 = vpop.f32.mrb[5].mxu0 }
 0x335   : > { %v669_v50 = vadd.f32 %v824_v46, %v668_v49 }
 0x336   : > { %688 = vst [vmem:[%s340_s12 + $0x8] sm:$0xff] %v674_v48 }
 0x337   : > { %687 = vst [vmem:[%s340_s12] sm:$0xff] %v669_v50  ;;  %v1005_v51 = vpop.f32.mrb[4].mxu1 }
 0x338   : > { %v684_v52 = vadd.f32 %v1005_v51, %v824_v46  ;;  %v678_v53 = vpop.f32.mrb[5].mxu1 }
 0x339   : > { %v679_v54 = vadd.f32 %v824_v46, %v678_v53 }
 0x33a   : > { %690 = vst [vmem:[%s340_s12 + $0x18] sm:$0xff] %v684_v52 }
 0x33b   : > { %689 = vst [vmem:[%s340_s12 + $0x10] sm:$0xff] %v679_v54 }
 0x33c   : > { %1326 = shalt.err (!%p1323_p4)
}
 0x33d   : > { %s1327_s13 = scalar_lea.hbm %s1684_s11, 512  ;;  %s1331_s14 = scalar_lea.hbm %s1735_s7, 1024 }
 0x33e   : > { %p1328_p9 = scmp.ne.s32.totalorder %s1684_s11, %s1327_s13  ;;  %p1332_p8 = scmp.lt.u32.totalorder %s1684_s11, %s1735_s7 }
 0x33f   : > { %p1333_p13 = scmp.lt.u32.totalorder %s1331_s14, %s1327_s13  ;;  %p1335_p10 = scmp.lt.u32.totalorder %s1327_s13, %s1684_s11 }
 0x340   : > { %p1329_p0 = pnand %p1328_p9, %p1592_p5 }
 0x341   : > { %p1334_p6 = por %p1333_p13, %p1332_p8 }
 0x342   : > { %p1330_p11 = pneg %p1329_p0 }
 0x343   : > { %p1336_p3 = por %p1335_p10, %p1334_p6 }
 0x345   : > { %p1337_p7 = pnand %p1336_p3, %p1330_p11 }
 0x347   : > { %1340 = shalt.err (!%p1337_p7)
}
 0x348   : > { %s1396_s16 = smov 128   ;;  %s1397_s29 = smov 8  }
 0x349   : > { %1132 = dma.vmem_to_hbm [thread:$0]  (%p1592_p5), %s1679_s20, 512, %s1684_s11, %s692_s23, %s1396_s16, %s1396_s16, %s1397_s29  }
 0x34a PF: > { %s1755_s28 = sld [smem:[#allocation15_spill]]  ;;  %s720_s8 = sand.u32 1, %s1375_s24  }
 0x34b   : > { %p1757_p1 = scmp.ge.s32.totalorder %s1387_s27, 2  ;;  %s721_s30 = scalar_lea.sflag [#allocation4], %s720_s8 }
 0x350   : > { %p1756_p12 = scmp.ne.s32.totalorder %s1755_s28, 0 }
 0x352   : > { %p1149_p2 = pnand %p1757_p1, %p1756_p12 }
 0x354   : > { %1370 = dma.done.wait (!%p1149_p2), %s721_s30, 512  }
 0x355   : > { %1372 = vsyncadd (!%p1149_p2), %s721_s30, 4294966784  ;;  %p22_p4 = scmp.ge.s32.totalorder %s1578_s22, 4   ;;  %s1758_s24 = smov %s1379_s25 }
 0x356   : > { %s1759_s25 = smov %s1383_s26  ;;  %s1760_s26 = smov %s1588_s18 }
 0x357   : > { %s1761_s27 = smov %s1578_s22  ;;  %24 = sbr.rel (!%p22_p4) target bundleno = 7 (0x7), region = 105 }
 0x35e   :  { %726 = vsyncpa [#allocation3], 1 }
 0x35f   :  { %728 = vsyncpa [#allocation3 + $0x1], 1 }
 0x360   :  { %729 = vsyncpa [#allocation6], 1 }
 0x361   :  { %730 = vsyncpa [#allocation9], 1 }
 0x362   :  { %731 = vsyncpa [#allocation4], 1 }
 0x363   :  { %733 = vsyncpa [#allocation4 + $0x1], 1 }

</bundles_post_ra>
